<compile_context>
chip_gen: v5e
topology: v5e:2x2
jax: 0.10.0
libtpu: 0.0.40
codegen_flags: <defaults>
</compile_context>

<pallas_src>
import jax
import jax.numpy as jnp
from jax import lax
from jax.experimental import pallas as pl
from jax.experimental.pallas import tpu as pltpu


def _pick_tile(n, candidates=(512, 256, 128)):
    for c in candidates:
        if n % c == 0:
            return c
    return n  # fall back to the full (untiled) extent


def _prep_kernel(inci_ref, x_ref, w_ref, s_ref, xw_scratch):
    """Stage 1: S[e_tile] = inci[:, e_tile].T @ (X @ W_pad).

    inci_ref   : (N, TE)   bf16 column block of the incidence matrix
    x_ref      : (N, Din)  f32 node features (grid-invariant)
    w_ref      : (Din, Dp) f32 zero-padded weight (grid-invariant)
    s_ref      : (TE, Dp)  f32 output block
    xw_scratch : (N, Dp)   f32 scratch holding X @ W_pad, computed once
    """
    @pl.when(pl.program_id(0) == 0)
    def _():
        xw_scratch[...] = jnp.dot(
            x_ref[...], w_ref[...], preferred_element_type=jnp.float32)

    # inci is stored as bf16 (0/1 entries -> exact); upcast for f32 math.
    inci_f32 = inci_ref[...].astype(jnp.float32)
    # Contract the node axis of both operands (no explicit .T relayout):
    # (TE, Dp) = inci_block.T @ XW.
    s_ref[...] = lax.dot_general(
        inci_f32, xw_scratch[...],
        dimension_numbers=(((0,), (0,)), ((), ())),
        preferred_element_type=jnp.float32)


def _aggregate_kernel(inci_ref, s_ref, o_ref):
    """Stage 2: out[row_tile] = relu(inci[row_tile] @ S).

    inci_ref : (TM, E)  bf16 row block of the incidence matrix
    s_ref    : (E, Dp)  f32 edge summary (grid-invariant)
    o_ref    : (TM, Dp) f32 output block (lane-dense, Dp % 128 == 0)
    """
    inci_f32 = inci_ref[...].astype(jnp.float32)
    out = jnp.dot(inci_f32, s_ref[...], preferred_element_type=jnp.float32)
    o_ref[...] = jnp.maximum(out, 0.0)


def encoder_edge_layer_cora(inputs, inci_mat, weight):
    N, din = inputs.shape
    n2, E = inci_mat.shape
    assert n2 == N
    din2, dout = weight.shape
    assert din2 == din

    # Lane-dense output: zero-pad Dout up to a multiple of 128; slice after.
    dpad = ((dout + 127) // 128) * 128
    w_pad = jnp.pad(weight.astype(jnp.float32), ((0, 0), (0, dpad - dout)))

    # 0/1 incidence entries are exactly representable in bf16.
    inci_bf = inci_mat.astype(jnp.bfloat16)
    x_f32 = inputs.astype(jnp.float32)

    te = _pick_tile(E)   # edge-tile for stage 1
    tm = _pick_tile(N)   # node row-tile for stage 2

    # ---- Stage 1: S = inci.T @ (X @ W_pad), shape (E, dpad) --------------
    prep_cost = pl.CostEstimate(
        flops=2 * N * din * dpad + 2 * N * E * dpad,
        transcendentals=0,
        bytes_accessed=N * E * 2 + N * din * 4 + din * dpad * 4 + E * dpad * 4,
    )
    s = pl.pallas_call(
        _prep_kernel,
        out_shape=jax.ShapeDtypeStruct((E, dpad), jnp.float32),
        grid_spec=pltpu.PrefetchScalarGridSpec(
            num_scalar_prefetch=0,
            grid=(E // te,),
            in_specs=[
                pl.BlockSpec((N, te), lambda e: (0, e)),      # inci col-block
                pl.BlockSpec((N, din), lambda e: (0, 0)),     # full X
                pl.BlockSpec((din, dpad), lambda e: (0, 0)),  # padded W
            ],
            out_specs=pl.BlockSpec((te, dpad), lambda e: (e, 0)),
            scratch_shapes=[pltpu.VMEM((N, dpad), jnp.float32)],
        ),
        compiler_params=pltpu.CompilerParams(
            # XW scratch is written on step 0 and reused -> sequential axis.
            dimension_semantics=("arbitrary",),
            vmem_limit_bytes=48 * 1024 * 1024,
        ),
        cost_estimate=prep_cost,
    )(inci_bf, x_f32, w_pad)

    # ---- Stage 2: out = relu(inci @ S), shape (N, dpad) ------------------
    agg_cost = pl.CostEstimate(
        flops=2 * N * E * dpad,
        transcendentals=0,
        bytes_accessed=N * E * 2 + E * dpad * 4 + N * dpad * 4,
    )
    out_pad = pl.pallas_call(
        _aggregate_kernel,
        out_shape=jax.ShapeDtypeStruct((N, dpad), jnp.float32),
        grid_spec=pltpu.PrefetchScalarGridSpec(
            num_scalar_prefetch=0,
            grid=(N // tm,),
            in_specs=[
                pl.BlockSpec((tm, E), lambda i: (i, 0)),      # inci row-block
                pl.BlockSpec((E, dpad), lambda i: (0, 0)),    # S (invariant)
            ],
            out_specs=pl.BlockSpec((tm, dpad), lambda i: (i, 0)),
        ),
        compiler_params=pltpu.CompilerParams(
            # Row blocks are independent -> allow megacore sharding (v7x).
            dimension_semantics=("parallel",),
            vmem_limit_bytes=48 * 1024 * 1024,
        ),
        cost_estimate=agg_cost,
    )(inci_bf, s)

    # TODO(synk): for very large graphs (E not a multiple of 128 or a full
    # (N, E) block exceeding VMEM) pad E to a multiple of 128 and tile Din in
    # stage 1; not needed at these shapes.
    return out_pad[:, :dout]


def glorot_init(key, input_dim, output_dim):
    """Matches the PyTorch module: uniform(-r, r), r = sqrt(1/(din+dout))."""
    init_range = jnp.sqrt(1.0 / (input_dim + output_dim))
    u = jax.random.uniform(key, (input_dim, output_dim), dtype=jnp.float32)
    return u * 2.0 * init_range - init_range


if __name__ == "__main__":
    # Small shapes consistent with the forward pass.
    N, E = 128, 256           # nodes, edges
    DIN, DOUT = 64, 32        # input_dim, output_dim

    key = jax.random.PRNGKey(0)
    k_x, k_inci, k_w = jax.random.split(key, 3)

    inputs = jax.random.normal(k_x, (N, DIN), dtype=jnp.float32)
    # binary-ish incidence matrix
    inci_mat = (jax.random.uniform(k_inci, (N, E)) < 0.05).astype(jnp.float32)
    weight = glorot_init(k_w, DIN, DOUT)

    out = encoder_edge_layer_cora(inputs, inci_mat, weight)
    out = jax.block_until_ready(out)

    # Pure-JAX reference check (original association).
    adj = inci_mat @ inci_mat.T
    ref = jnp.maximum(adj @ (inputs @ weight), 0.0)
    assert out.shape == (N, DOUT)
    assert jnp.allclose(out, ref, atol=1e-4, rtol=1e-4)

    print("KERNEL_OK")
</pallas_src>

<mosaic_0001>
module attributes {stable_mosaic.version = 11 : i64} {
  func.func @_prep_kernel(%arg0: i32, %arg1: memref<128x256xbf16, #tpu.memory_space<vmem>>, %arg2: memref<128x64xf32, #tpu.memory_space<vmem>>, %arg3: memref<64x128xf32, #tpu.memory_space<vmem>>, %arg4: memref<256x128xf32, #tpu.memory_space<vmem>>, %arg5: memref<128x128xf32, #tpu.memory_space<vmem>>) attributes {dimension_semantics = [#tpu.dimension_semantics<arbitrary>], iteration_bounds = array<i64: 1>, scalar_prefetch = 0 : i64, scratch_operands = 1 : i64, tpu.core_type = #tpu.core_type<tc>, window_params = [{transform_indices = @transform_0, window_bounds = array<i64: 128, 256>}, {pipeline_mode = #tpu.pipeline_mode<synchronous>, transform_indices = @transform_1, window_bounds = array<i64: 128, 64>}, {pipeline_mode = #tpu.pipeline_mode<synchronous>, transform_indices = @transform_2, window_bounds = array<i64: 64, 128>}, {transform_indices = @transform_3, window_bounds = array<i64: 256, 128>}]} {
    %c0_i32 = arith.constant 0 : i32
    %0 = arith.cmpi eq, %arg0, %c0_i32 : i32
    %1 = arith.extui %0 : i1 to i32
    %c0_i32_0 = arith.constant 0 : i32
    %2 = arith.cmpi ne, %1, %c0_i32_0 : i32
    scf.if %2 {
      %c0_6 = arith.constant 0 : index
      %c0_7 = arith.constant 0 : index
      %8 = vector.load %arg2[%c0_6, %c0_7] : memref<128x64xf32, #tpu.memory_space<vmem>>, vector<128x64xf32>
      %c0_8 = arith.constant 0 : index
      %c0_9 = arith.constant 0 : index
      %9 = vector.load %arg3[%c0_8, %c0_9] : memref<64x128xf32, #tpu.memory_space<vmem>>, vector<64x128xf32>
      %cst_10 = arith.constant dense<0.000000e+00> : vector<128x128xf32>
      %10 = tpu.matmul %8, %9, %cst_10 {dimension_numbers = #tpu.dot_dimension_numbers<[1], [0], [0], [1], [0, 0, 1, 1], [], []>} : vector<128x64xf32>, vector<64x128xf32>, vector<128x128xf32> -> vector<128x128xf32>
      %c0_11 = arith.constant 0 : index
      %c0_12 = arith.constant 0 : index
      %11 = vector.load %arg5[%c0_11, %c0_12] : memref<128x128xf32, #tpu.memory_space<vmem>>, vector<128x128xf32>
      tpu.vector_store %arg5[%c0_11, %c0_12], %10 {strides = array<i32>} : memref<128x128xf32, #tpu.memory_space<vmem>>, vector<128x128xf32>,
    } else {
    }
    %c0 = arith.constant 0 : index
    %c0_1 = arith.constant 0 : index
    %3 = vector.load %arg1[%c0, %c0_1] : memref<128x256xbf16, #tpu.memory_space<vmem>>, vector<128x256xbf16>
    %4 = arith.extf %3 : vector<128x256xbf16> to vector<128x256xf32>
    %c0_2 = arith.constant 0 : index
    %c0_3 = arith.constant 0 : index
    %5 = vector.load %arg5[%c0_2, %c0_3] : memref<128x128xf32, #tpu.memory_space<vmem>>, vector<128x128xf32>
    %cst = arith.constant dense<0.000000e+00> : vector<256x128xf32>
    %6 = tpu.matmul %4, %5, %cst {dimension_numbers = #tpu.dot_dimension_numbers<[0], [0], [1], [1], [0, 1, 1, 1], [], []>} : vector<128x256xf32>, vector<128x128xf32>, vector<256x128xf32> -> vector<256x128xf32>
    %c0_4 = arith.constant 0 : index
    %c0_5 = arith.constant 0 : index
    %7 = vector.load %arg4[%c0_4, %c0_5] : memref<256x128xf32, #tpu.memory_space<vmem>>, vector<256x128xf32>
    tpu.vector_store %arg4[%c0_4, %c0_5], %6 {strides = array<i32>} : memref<256x128xf32, #tpu.memory_space<vmem>>, vector<256x128xf32>,
    return
  }
  func.func @transform_0(%arg0: i32) -> (i32, i32) {
    %c0_i32 = arith.constant 0 : i32
    %c0_i32_0 = arith.constant 0 : i32
    return %c0_i32, %arg0 : i32, i32
  }
  func.func @transform_1(%arg0: i32) -> (i32, i32) {
    %c0_i32 = arith.constant 0 : i32
    %c0_i32_0 = arith.constant 0 : i32
    %c0_i32_1 = arith.constant 0 : i32
    return %c0_i32, %c0_i32_0 : i32, i32
  }
  func.func @transform_2(%arg0: i32) -> (i32, i32) {
    %c0_i32 = arith.constant 0 : i32
    %c0_i32_0 = arith.constant 0 : i32
    %c0_i32_1 = arith.constant 0 : i32
    return %c0_i32, %c0_i32_0 : i32, i32
  }
  func.func @transform_3(%arg0: i32) -> (i32, i32) {
    %c0_i32 = arith.constant 0 : i32
    %c0_i32_0 = arith.constant 0 : i32
    return %arg0, %c0_i32 : i32, i32
  }
}

</mosaic_0001>

<bundles_post_ra>
// kernel: tpu_custom_call.1
= control target key start
LH: loop header
LB: loop body
LE: loop exit
PB: predicated region body
PF: predicated region fallthrough
CT: control target
= control target key end

     0   :  { %s891_s0 = inlined_call_operand.vmem [shape: bf16[128,256], index: 0, kind: input, shape index: {}]   ;;  %s892_s1 = inlined_call_operand.vmem [shape: f32[128,64], index: 1, kind: input, shape index: {}]   ;;  %s893_s2 = inlined_call_operand.vmem [shape: f32[64,128], index: 2, kind: input, shape index: {}]   ;;  %s894_s3 = inlined_call_operand.hbm [shape: f32[256,128], index: 3, kind: output, shape index: {}]  }
   0x1   :  { %v42_v0 = vld [vmem:[%s893_s2 + $0x38] sm:$0xff]  ;;  %v41_v1 = vld [vmem:[%s893_s2 + $0x30] sm:$0xff]  ;;  %v40_v2 = vld [vmem:[%s893_s2 + $0x28] sm:$0xff] }
   0x2   :  { %100 = vmatpush.msra.mxu0 %v42_v0  ;;  %v173_v3 = vld [vmem:[%s891_s0] sm:$0xff] }
   0x3   :  { %v39_v4 = vld [vmem:[%s893_s2 + $0x20] sm:$0xff]  ;;  %v189_v5 = vunpack.c.l.bf16 %v173_v3  ;;  %v190_v6 = vunpack.c.h.bf16 %v173_v3 }
   0x4   :  { %101 = vmatpush.msra.mxu0 %v41_v1 }
   0x5   :  { %8 = vsyncpa [#allocation4], 0  ;;  %v38_v7 = vld [vmem:[%s893_s2 + $0x18] sm:$0xff]  ;;  %v515_v8 = vpack.i.bf16 %v190_v6, %v189_v5  ;;  %v37_v9 = vld [vmem:[%s893_s2 + $0x10] sm:$0xff]  ;;  %vm43_vm0 = vcmask 523264   ;;  %s452_s10 = sshll.u32 %s894_s3, 4  ;;  %s453_s10 = int_to_ptr.hbm [resolvable:$true] %s452_s10 }
   0x6   :  { %102 = vmatpush.msra.mxu0 %v40_v2  ;;  %v174_v10 = vld [vmem:[%s891_s0 + $0x8] sm:$0xff]  ;;  %v35_v14 = vld [vmem:[%s893_s2] sm:$0xff]  ;;  %v175_v17 = vld [vmem:[%s891_s0 + $0x10] sm:$0xff]  ;;  %s654_s11 = smov 128   ;;  %s655_s12 = smov 8  }
   0x7   :  { %516 = vxpose.xlu0.b32.start [1/16] %v515_v8, 128  ;;  %v191_v11 = vunpack.c.l.bf16 %v174_v10  ;;  %v192_v12 = vunpack.c.h.bf16 %v174_v10  ;;  %v36_v13 = vld [vmem:[%s893_s2 + $0x8] sm:$0xff]  ;;  %v19_v16 = vld [vmem:[%s892_s1] sm:$0xff]  ;;  %v193_v18 = vunpack.c.l.bf16 %v175_v17  ;;  %v194_v19 = vunpack.c.h.bf16 %v175_v17  ;;  %v176_v22 = vld [vmem:[%s891_s0 + $0x18] sm:$0xff] }
   0x8   :  { %103 = vmatpush.msra.mxu0 %v39_v4  ;;  %v20_v21 = vld [vmem:[%s892_s1 + $0x8] sm:$0xff]  ;;  %v195_v23 = vunpack.c.l.bf16 %v176_v22  ;;  %v196_v24 = vunpack.c.h.bf16 %v176_v22  ;;  %v21_v26 = vld [vmem:[%s892_s1 + $0x10] sm:$0xff]  ;;  %v177_v27 = vld [vmem:[%s891_s0 + $0x20] sm:$0xff] }
   0x9   :  { %v517_v15 = vpack.i.bf16 %v192_v12, %v191_v11  ;;  %v519_v20 = vpack.i.bf16 %v194_v19, %v193_v18  ;;  %v197_v28 = vunpack.c.l.bf16 %v177_v27  ;;  %v198_v29 = vunpack.c.h.bf16 %v177_v27  ;;  %v22_v31 = vld [vmem:[%s892_s1 + $0x18] sm:$0xff]  ;;  %v178_v32 = vld [vmem:[%s891_s0 + $0x28] sm:$0xff]  ;;  %v23_v36 = vld [vmem:[%s892_s1 + $0x20] sm:$0xff] }
   0xa   :  { %104 = vmatpush.msra.mxu0 %v38_v7  ;;  %v521_v25 = vpack.i.bf16 %v196_v24, %v195_v23  ;;  %v199_v33 = vunpack.c.l.bf16 %v178_v32  ;;  %v200_v34 = vunpack.c.h.bf16 %v178_v32  ;;  %v179_v37 = vld [vmem:[%s891_s0 + $0x30] sm:$0xff]  ;;  %v24_v41 = vld [vmem:[%s892_s1 + $0x28] sm:$0xff]  ;;  %v180_v42 = vld [vmem:[%s891_s0 + $0x38] sm:$0xff] }
   0xb   :  { %v523_v30 = vpack.i.bf16 %v198_v29, %v197_v28  ;;  %v201_v38 = vunpack.c.l.bf16 %v179_v37  ;;  %v202_v39 = vunpack.c.h.bf16 %v179_v37  ;;  %v203_v43 = vunpack.c.l.bf16 %v180_v42  ;;  %v25_v46 = vld [vmem:[%s892_s1 + $0x30] sm:$0xff]  ;;  %v181_v47 = vld [vmem:[%s891_s0 + $0x40] sm:$0xff]  ;;  %v26_v51 = vld [vmem:[%s892_s1 + $0x38] sm:$0xff] }
   0xc   :  { %105 = vmatpush.msra.mxu0 %v37_v9  ;;  %v525_v35 = vpack.i.bf16 %v200_v34, %v199_v33  ;;  %v204_v44 = vunpack.c.h.bf16 %v180_v42  ;;  %v205_v48 = vunpack.c.l.bf16 %v181_v47  ;;  %v206_v49 = vunpack.c.h.bf16 %v181_v47  ;;  %v182_v52 = vld [vmem:[%s891_s0 + $0x48] sm:$0xff]  ;;  %v27_v56 = vld [vmem:[%s892_s1 + $0x40] sm:$0xff]  ;;  %v183_v57 = vld [vmem:[%s891_s0 + $0x50] sm:$0xff] }
   0xd   :  { %v527_v40 = vpack.i.bf16 %v202_v39, %v201_v38  ;;  %v207_v53 = vunpack.c.l.bf16 %v182_v52  ;;  %v208_v54 = vunpack.c.h.bf16 %v182_v52  ;;  %v209_v58 = vunpack.c.l.bf16 %v183_v57  ;;  %v28_v61 = vld [vmem:[%s892_s1 + $0x48] sm:$0xff]  ;;  %v184_v62 = vld [vmem:[%s891_s0 + $0x58] sm:$0xff]  ;;  %v29_v2 = vld [vmem:[%s892_s1 + $0x50] sm:$0xff] }
   0xe   :  { %106 = vmatpush.msra.mxu0 %v36_v13  ;;  %v529_v45 = vpack.i.bf16 %v204_v44, %v203_v43  ;;  %v531_v50 = vpack.i.bf16 %v206_v49, %v205_v48  ;;  %v210_v59 = vunpack.c.h.bf16 %v183_v57  ;;  %v211_v63 = vunpack.c.l.bf16 %v184_v62  ;;  %v185_v3 = vld [vmem:[%s891_s0 + $0x60] sm:$0xff]  ;;  %v30_v7 = vld [vmem:[%s892_s1 + $0x58] sm:$0xff]  ;;  %v186_v8 = vld [vmem:[%s891_s0 + $0x68] sm:$0xff] }
   0xf   :  { %518 = vxpose.xlu0.b32.cont [2/16] %v517_v15, 128  ;;  %v533_v55 = vpack.i.bf16 %v208_v54, %v207_v53  ;;  %v212_v0 = vunpack.c.h.bf16 %v184_v62  ;;  %v213_v4 = vunpack.c.l.bf16 %v185_v3  ;;  %v214_v5 = vunpack.c.h.bf16 %v185_v3  ;;  %v31_v12 = vld [vmem:[%s892_s1 + $0x60] sm:$0xff]  ;;  %v187_v13 = vld [vmem:[%s891_s0 + $0x70] sm:$0xff]  ;;  %v32_v17 = vld [vmem:[%s892_s1 + $0x68] sm:$0xff] }
  0x10   :  { %107 = vmatpush.msra.mxu0 %v35_v14  ;;  %v535_v60 = vpack.i.bf16 %v210_v59, %v209_v58  ;;  %v215_v9 = vunpack.c.l.bf16 %v186_v8  ;;  %v216_v10 = vunpack.c.h.bf16 %v186_v8  ;;  %v217_v14 = vunpack.c.l.bf16 %v187_v13  ;;  %v188_v18 = vld [vmem:[%s891_s0 + $0x78] sm:$0xff]  ;;  %v33_v22 = vld [vmem:[%s892_s1 + $0x70] sm:$0xff]  ;;  %s653_s0 = smov [#allocation3]  }
  0x11   :  { %464 = vmatmul.msk.f32.vlgmr.msra.gmra.mxu0 %vm43_vm0, %v19_v16  ;;  %v537_v1 = vpack.i.bf16 %v212_v0, %v211_v63  ;;  %v539_v6 = vpack.i.bf16 %v214_v5, %v213_v4  ;;  %v218_v15 = vunpack.c.h.bf16 %v187_v13  ;;  %v219_v19 = vunpack.c.l.bf16 %v188_v18  ;;  %v34_v23 = vld [vmem:[%s892_s1 + $0x78] sm:$0xff]  ;;  %s450_s1 = sshll.u32 %s653_s0, 4  ;;  %s451_s1 = int_to_ptr.vmem [resolvable:$true] %s450_s1 }
  0x12   :  { %v541_v11 = vpack.i.bf16 %v216_v10, %v215_v9 }
  0x13   :  { %v543_v16 = vpack.i.bf16 %v218_v15, %v217_v14 }
  0x17   :  { %520 = vxpose.xlu0.b32.cont [3/16] %v519_v20, 128  ;;  %v220_v20 = vunpack.c.h.bf16 %v188_v18 }
  0x19   :  { %465 = vmatmul.msk.f32.gmra.mxu0 %vm43_vm0, %v20_v21  ;;  %v545_v21 = vpack.i.bf16 %v220_v20, %v219_v19 }
  0x1f   :  { %522 = vxpose.xlu0.b32.cont [4/16] %v521_v25, 128 }
  0x21   :  { %466 = vmatmul.msk.f32.gmra.mxu0 %vm43_vm0, %v21_v26 }
  0x27   :  { %524 = vxpose.xlu0.b32.cont [5/16] %v523_v30, 128 }
  0x29   :  { %467 = vmatmul.msk.f32.gmra.mxu0 %vm43_vm0, %v22_v31 }
  0x2f   :  { %526 = vxpose.xlu0.b32.cont [6/16] %v525_v35, 128 }
  0x31   :  { %468 = vmatmul.msk.f32.gmra.mxu0 %vm43_vm0, %v23_v36 }
  0x37   :  { %528 = vxpose.xlu0.b32.cont [7/16] %v527_v40, 128 }
  0x39   :  { %469 = vmatmul.msk.f32.gmra.mxu0 %vm43_vm0, %v24_v41 }
  0x3f   :  { %530 = vxpose.xlu0.b32.cont [8/16] %v529_v45, 128 }
  0x41   :  { %470 = vmatmul.msk.f32.gmra.mxu0 %vm43_vm0, %v25_v46 }
  0x47   :  { %532 = vxpose.xlu0.b32.cont [9/16] %v531_v50, 128 }
  0x49   :  { %471 = vmatmul.msk.f32.gmra.mxu0 %vm43_vm0, %v26_v51 }
  0x4f   :  { %534 = vxpose.xlu0.b32.cont [10/16] %v533_v55, 128 }
  0x51   :  { %472 = vmatmul.msk.f32.gmra.mxu0 %vm43_vm0, %v27_v56 }
  0x57   :  { %536 = vxpose.xlu0.b32.cont [11/16] %v535_v60, 128 }
  0x59   :  { %473 = vmatmul.msk.f32.gmra.mxu0 %vm43_vm0, %v28_v61 }
  0x5f   :  { %538 = vxpose.xlu0.b32.cont [12/16] %v537_v1, 128 }
  0x61   :  { %474 = vmatmul.msk.f32.gmra.mxu0 %vm43_vm0, %v29_v2 }
  0x67   :  { %540 = vxpose.xlu0.b32.cont [13/16] %v539_v6, 128 }
  0x69   :  { %475 = vmatmul.msk.f32.gmra.mxu0 %vm43_vm0, %v30_v7 }
  0x6f   :  { %542 = vxpose.xlu0.b32.cont [14/16] %v541_v11, 128 }
  0x71   :  { %476 = vmatmul.msk.f32.gmra.mxu0 %vm43_vm0, %v31_v12 }
  0x77   :  { %544 = vxpose.xlu0.b32.cont [15/16] %v543_v16, 128 }
  0x79   :  { %477 = vmatmul.msk.f32.gmra.mxu0 %vm43_vm0, %v32_v17 }
  0x7f   :  { %546 = vxpose.xlu0.b32.end [16/16] %v545_v21, 128 }
  0x81   :  { %478 = vmatmul.msk.f32.gmra.mxu0 %vm43_vm0, %v33_v22 }
  0x89   :  { %479 = vmatmul.msk.f32.gmra.mxu0 %vm43_vm0, %v34_v23 }
  0x8e   :  { %v812_v24 = vpop.f32.mrf.mxu0 }
  0x96   :  { %v814_v25 = vpop.f32.mrf.mxu0 }
  0x9e   :  { %v816_v26 = vpop.f32.mrf.mxu0 }
  0xa6   :  { %v818_v27 = vpop.f32.mrf.mxu0 }
  0xab   :  { %v820_v28 = vpop.trf.xlu0 }
  0xac   :  { %v548_v56 = vunpack.i.l.bf16 %v820_v28  ;;  %v551_v8 = vunpack.i.h.bf16 %v820_v28 }
  0xae   :  { %v121_v29 = vpop.f32.mrf.mxu0 }
  0xb3   :  { %v822_v30 = vpop.trf.xlu0 }
  0xb4   :  { %v553_v60 = vunpack.i.l.bf16 %v822_v30  ;;  %v556_v11 = vunpack.i.h.bf16 %v822_v30 }
  0xb6   :  { %v124_v31 = vpop.f32.mrf.mxu0 }
  0xbb   :  { %v824_v32 = vpop.trf.xlu0 }
  0xbc   :  { %v558_v63 = vunpack.i.l.bf16 %v824_v32  ;;  %v561_v14 = vunpack.i.h.bf16 %v824_v32 }
  0xbe   :  { %v127_v33 = vpop.f32.mrf.mxu0 }
  0xc3   :  { %v826_v34 = vpop.trf.xlu0 }
  0xc4   :  { %v563_v2 = vunpack.i.l.bf16 %v826_v34  ;;  %v566_v17 = vunpack.i.h.bf16 %v826_v34 }
  0xc6   :  { %v130_v35 = vpop.f32.mrf.mxu0 }
  0xcb   :  { %v828_v36 = vpop.trf.xlu0 }
  0xcc   :  { %v568_v5 = vunpack.i.l.bf16 %v828_v36  ;;  %v571_v20 = vunpack.i.h.bf16 %v828_v36 }
  0xce   :  { %v133_v37 = vpop.f32.mrf.mxu0 }
  0xd3   :  { %v830_v38 = vpop.trf.xlu0 }
  0xd4   :  { %v573_v7 = vunpack.i.l.bf16 %v830_v38  ;;  %v576_v22 = vunpack.i.h.bf16 %v830_v38 }
  0xd6   :  { %v136_v39 = vpop.f32.mrf.mxu0 }
  0xdb   :  { %v832_v40 = vpop.trf.xlu0 }
  0xdc   :  { %v578_v10 = vunpack.i.l.bf16 %v832_v40  ;;  %v581_v23 = vunpack.i.h.bf16 %v832_v40 }
  0xde   :  { %v139_v41 = vpop.f32.mrf.mxu0 }
  0xe3   :  { %v834_v42 = vpop.trf.xlu0 }
  0xe4   :  { %v586_v57 = vunpack.i.h.bf16 %v834_v42  ;;  %v583_v13 = vunpack.i.l.bf16 %v834_v42 }
  0xe6   :  { %v142_v43 = vpop.f32.mrf.mxu0 }
  0xeb   :  { %v836_v44 = vpop.trf.xlu0 }
  0xec   :  { %v591_v61 = vunpack.i.h.bf16 %v836_v44  ;;  %v588_v16 = vunpack.i.l.bf16 %v836_v44 }
  0xee   :  { %v145_v45 = vpop.f32.mrf.mxu0 }
  0xf3   :  { %v838_v46 = vpop.trf.xlu0 }
  0xf4   :  { %v596_v0 = vunpack.i.h.bf16 %v838_v46  ;;  %v593_v19 = vunpack.i.l.bf16 %v838_v46 }
  0xf6   :  { %v148_v47 = vpop.f32.mrf.mxu0 }
  0xfb   :  { %v840_v48 = vpop.trf.xlu0 }
  0xfc   :  { %v601_v3 = vunpack.i.h.bf16 %v840_v48  ;;  %v598_v21 = vunpack.i.l.bf16 %v840_v48 }
  0xfe   :  { %v151_v49 = vpop.f32.mrf.mxu0 }
 0x103   :  { %v842_v50 = vpop.trf.xlu0 }
 0x104   :  { %v603_v55 = vunpack.i.l.bf16 %v842_v50  ;;  %v606_v6 = vunpack.i.h.bf16 %v842_v50 }
 0x106   :  { %v154_v51 = vpop.f32.mrf.mxu0 }
 0x107   :  { %301 = vmatpush.msra.mxu1 %v154_v51  ;;  %480 = vmatpush.msra.mxu2 %v154_v51 }
 0x108   :  { %481 = vmatpush.msra.mxu3 %v154_v51 }
 0x109   :  { %302 = vmatpush.msra.mxu1 %v151_v49  ;;  %482 = vmatpush.msra.mxu2 %v151_v49 }
 0x10a   :  { %483 = vmatpush.msra.mxu3 %v151_v49 }
 0x10b   :  { %303 = vmatpush.msra.mxu1 %v148_v47  ;;  %484 = vmatpush.msra.mxu2 %v148_v47  ;;  %v844_v52 = vpop.trf.xlu0 }
 0x10c   :  { %485 = vmatpush.msra.mxu3 %v148_v47  ;;  %v608_v59 = vunpack.i.l.bf16 %v844_v52  ;;  %v611_v9 = vunpack.i.h.bf16 %v844_v52 }
 0x10d   :  { %304 = vmatpush.msra.mxu1 %v145_v45  ;;  %486 = vmatpush.msra.mxu2 %v145_v45 }
 0x10e   :  { %487 = vmatpush.msra.mxu3 %v145_v45 }
 0x10f   :  { %305 = vmatpush.msra.mxu1 %v142_v43  ;;  %488 = vmatpush.msra.mxu2 %v142_v43 }
 0x110   :  { %489 = vmatpush.msra.mxu3 %v142_v43 }
 0x111   :  { %306 = vmatpush.msra.mxu1 %v139_v41  ;;  %490 = vmatpush.msra.mxu2 %v139_v41 }
 0x112   :  { %491 = vmatpush.msra.mxu3 %v139_v41 }
 0x113   :  { %307 = vmatpush.msra.mxu1 %v136_v39  ;;  %492 = vmatpush.msra.mxu2 %v136_v39  ;;  %v846_v53 = vpop.trf.xlu0 }
 0x114   :  { %493 = vmatpush.msra.mxu3 %v136_v39  ;;  %v613_v62 = vunpack.i.l.bf16 %v846_v53  ;;  %v616_v12 = vunpack.i.h.bf16 %v846_v53 }
 0x115   :  { %308 = vmatpush.msra.mxu1 %v133_v37  ;;  %494 = vmatpush.msra.mxu2 %v133_v37 }
 0x116   :  { %495 = vmatpush.msra.mxu3 %v133_v37 }
 0x117   :  { %309 = vmatpush.msra.mxu1 %v130_v35  ;;  %496 = vmatpush.msra.mxu2 %v130_v35 }
 0x118   :  { %497 = vmatpush.msra.mxu3 %v130_v35 }
 0x119   :  { %310 = vmatpush.msra.mxu1 %v127_v33  ;;  %498 = vmatpush.msra.mxu2 %v127_v33 }
 0x11a   :  { %499 = vmatpush.msra.mxu3 %v127_v33 }
 0x11b   :  { %311 = vmatpush.msra.mxu1 %v124_v31  ;;  %500 = vmatpush.msra.mxu2 %v124_v31  ;;  %v617_v54 = vpop.trf.xlu0 }
 0x11c   :  { %501 = vmatpush.msra.mxu3 %v124_v31  ;;  %v618_v1 = vunpack.i.l.bf16 %v617_v54  ;;  %v621_v15 = vunpack.i.h.bf16 %v617_v54 }
 0x11d   :  { %312 = vmatpush.msra.mxu1 %v121_v29  ;;  %502 = vmatpush.msra.mxu2 %v121_v29 }
 0x11e   :  { %503 = vmatpush.msra.mxu3 %v121_v29 }
 0x11f   :  { %313 = vmatpush.msra.mxu1 %v818_v27  ;;  %504 = vmatpush.msra.mxu2 %v818_v27 }
 0x120   :  { %505 = vmatpush.msra.mxu3 %v818_v27 }
 0x121   :  { %314 = vmatpush.msra.mxu1 %v816_v26  ;;  %506 = vmatpush.msra.mxu2 %v816_v26 }
 0x122   :  { %507 = vmatpush.msra.mxu3 %v816_v26 }
 0x123   :  { %315 = vmatpush.msra.mxu1 %v814_v25  ;;  %508 = vmatpush.msra.mxu2 %v814_v25  ;;  %v622_v58 = vpop.trf.xlu0 }
 0x124   :  { %509 = vmatpush.msra.mxu3 %v814_v25  ;;  %v623_v4 = vunpack.i.l.bf16 %v622_v58  ;;  %v626_v18 = vunpack.i.h.bf16 %v622_v58 }
 0x125   :  { %316 = vmatpush.msra.mxu1 %v812_v24  ;;  %510 = vmatpush.msra.mxu2 %v812_v24 }
 0x126   :  { %511 = vmatpush.msra.mxu3 %v812_v24  ;;  %317 = vmatmul.f32.vlgmr.msra.gmra.mxu1 %v548_v56 }
 0x127   :  { %350 = vmatmul.f32.vlgmr.msra.gmra.mxu2 %v603_v55  ;;  %386 = vmatmul.f32.vlgmr.msra.gmra.mxu3 %v586_v57 }
 0x12e   :  { %320 = vmatmul.f32.gmra.mxu1 %v553_v60 }
 0x12f   :  { %353 = vmatmul.f32.gmra.mxu2 %v608_v59  ;;  %389 = vmatmul.f32.gmra.mxu3 %v591_v61 }
 0x136   :  { %323 = vmatmul.f32.gmra.mxu1 %v558_v63 }
 0x137   :  { %356 = vmatmul.f32.gmra.mxu2 %v613_v62  ;;  %392 = vmatmul.f32.gmra.mxu3 %v596_v0 }
 0x13e   :  { %326 = vmatmul.f32.gmra.mxu1 %v563_v2 }
 0x13f   :  { %359 = vmatmul.f32.gmra.mxu2 %v618_v1  ;;  %395 = vmatmul.f32.gmra.mxu3 %v601_v3 }
 0x146   :  { %329 = vmatmul.f32.gmra.mxu1 %v568_v5 }
 0x147   :  { %362 = vmatmul.f32.gmra.mxu2 %v623_v4  ;;  %398 = vmatmul.f32.gmra.mxu3 %v606_v6 }
 0x14e   :  { %332 = vmatmul.f32.gmra.mxu1 %v573_v7 }
 0x14f   :  { %365 = vmatmul.f32.gmra.mxu2 %v551_v8  ;;  %401 = vmatmul.f32.gmra.mxu3 %v611_v9 }
 0x156   :  { %335 = vmatmul.f32.gmra.mxu1 %v578_v10 }
 0x157   :  { %368 = vmatmul.f32.gmra.mxu2 %v556_v11  ;;  %404 = vmatmul.f32.gmra.mxu3 %v616_v12 }
 0x15e   :  { %338 = vmatmul.f32.gmra.mxu1 %v583_v13 }
 0x15f   :  { %371 = vmatmul.f32.gmra.mxu2 %v561_v14  ;;  %407 = vmatmul.f32.gmra.mxu3 %v621_v15 }
 0x166   :  { %341 = vmatmul.f32.gmra.mxu1 %v588_v16 }
 0x167   :  { %374 = vmatmul.f32.gmra.mxu2 %v566_v17  ;;  %410 = vmatmul.f32.gmra.mxu3 %v626_v18 }
 0x16e   :  { %344 = vmatmul.f32.gmra.mxu1 %v593_v19 }
 0x16f   :  { %377 = vmatmul.f32.gmra.mxu2 %v571_v20 }
 0x176   :  { %347 = vmatmul.f32.gmra.mxu1 %v598_v21 }
 0x177   :  { %380 = vmatmul.f32.gmra.mxu2 %v576_v22 }
 0x17f   :  { %383 = vmatmul.f32.gmra.mxu2 %v581_v23 }
 0x1a3   :  { %v318_v24 = vpop.f32.mrf.mxu1 }
 0x1a4   :  { %414 = vst [vmem:[#allocation3] sm:$0xff] %v318_v24 }
 0x1aa   :  { %v351_v25 = vpop.f32.mrf.mxu2  ;;  %v387_v26 = vpop.f32.mrf.mxu3 }
 0x1ab   :  { %425 = vst [vmem:[#allocation3 + $0x58] sm:$0xff] %v351_v25  ;;  %v321_v27 = vpop.f32.mrf.mxu1 }
 0x1ac   :  { %437 = vst [vmem:[#allocation3 + $0xb8] sm:$0xff] %v387_v26 }
 0x1ad   :  { %415 = vst [vmem:[#allocation3 + $0x8] sm:$0xff] %v321_v27 }
 0x1b2   :  { %v354_v28 = vpop.f32.mrf.mxu2  ;;  %v390_v29 = vpop.f32.mrf.mxu3 }
 0x1b3   :  { %426 = vst [vmem:[#allocation3 + $0x60] sm:$0xff] %v354_v28  ;;  %v324_v30 = vpop.f32.mrf.mxu1 }
 0x1b4   :  { %438 = vst [vmem:[#allocation3 + $0xc0] sm:$0xff] %v390_v29 }
 0x1b5   :  { %416 = vst [vmem:[#allocation3 + $0x10] sm:$0xff] %v324_v30 }
 0x1ba   :  { %v357_v31 = vpop.f32.mrf.mxu2  ;;  %v393_v32 = vpop.f32.mrf.mxu3 }
 0x1bb   :  { %427 = vst [vmem:[#allocation3 + $0x68] sm:$0xff] %v357_v31  ;;  %v327_v33 = vpop.f32.mrf.mxu1 }
 0x1bc   :  { %439 = vst [vmem:[#allocation3 + $0xc8] sm:$0xff] %v393_v32 }
 0x1bd   :  { %417 = vst [vmem:[#allocation3 + $0x18] sm:$0xff] %v327_v33 }
 0x1c2   :  { %v360_v34 = vpop.f32.mrf.mxu2  ;;  %v396_v35 = vpop.f32.mrf.mxu3 }
 0x1c3   :  { %428 = vst [vmem:[#allocation3 + $0x70] sm:$0xff] %v360_v34  ;;  %v330_v36 = vpop.f32.mrf.mxu1 }
 0x1c4   :  { %440 = vst [vmem:[#allocation3 + $0xd0] sm:$0xff] %v396_v35 }
 0x1c5   :  { %418 = vst [vmem:[#allocation3 + $0x20] sm:$0xff] %v330_v36 }
 0x1ca   :  { %v363_v37 = vpop.f32.mrf.mxu2  ;;  %v399_v38 = vpop.f32.mrf.mxu3 }
 0x1cb   :  { %429 = vst [vmem:[#allocation3 + $0x78] sm:$0xff] %v363_v37  ;;  %v333_v39 = vpop.f32.mrf.mxu1 }
 0x1cc   :  { %441 = vst [vmem:[#allocation3 + $0xd8] sm:$0xff] %v399_v38 }
 0x1cd   :  { %419 = vst [vmem:[#allocation3 + $0x28] sm:$0xff] %v333_v39 }
 0x1d2   :  { %v366_v40 = vpop.f32.mrf.mxu2  ;;  %v402_v41 = vpop.f32.mrf.mxu3 }
 0x1d3   :  { %430 = vst [vmem:[#allocation3 + $0x80] sm:$0xff] %v366_v40  ;;  %v336_v42 = vpop.f32.mrf.mxu1 }
 0x1d4   :  { %442 = vst [vmem:[#allocation3 + $0xe0] sm:$0xff] %v402_v41 }
 0x1d5   :  { %420 = vst [vmem:[#allocation3 + $0x30] sm:$0xff] %v336_v42 }
 0x1da   :  { %v369_v43 = vpop.f32.mrf.mxu2  ;;  %v405_v44 = vpop.f32.mrf.mxu3 }
 0x1db   :  { %431 = vst [vmem:[#allocation3 + $0x88] sm:$0xff] %v369_v43  ;;  %v339_v45 = vpop.f32.mrf.mxu1 }
 0x1dc   :  { %443 = vst [vmem:[#allocation3 + $0xe8] sm:$0xff] %v405_v44 }
 0x1dd   :  { %421 = vst [vmem:[#allocation3 + $0x38] sm:$0xff] %v339_v45 }
 0x1e2   :  { %v372_v46 = vpop.f32.mrf.mxu2  ;;  %v408_v47 = vpop.f32.mrf.mxu3 }
 0x1e3   :  { %432 = vst [vmem:[#allocation3 + $0x90] sm:$0xff] %v372_v46  ;;  %v342_v48 = vpop.f32.mrf.mxu1 }
 0x1e4   :  { %444 = vst [vmem:[#allocation3 + $0xf0] sm:$0xff] %v408_v47 }
 0x1e5   :  { %422 = vst [vmem:[#allocation3 + $0x40] sm:$0xff] %v342_v48 }
 0x1ea   :  { %v375_v49 = vpop.f32.mrf.mxu2  ;;  %v411_v50 = vpop.f32.mrf.mxu3 }
 0x1eb   :  { %433 = vst [vmem:[#allocation3 + $0x98] sm:$0xff] %v375_v49  ;;  %v345_v51 = vpop.f32.mrf.mxu1 }
 0x1ec   :  { %445 = vst [vmem:[#allocation3 + $0xf8] sm:$0xff] %v411_v50 }
 0x1ed   :  { %423 = vst [vmem:[#allocation3 + $0x48] sm:$0xff] %v345_v51 }
 0x1f2   :  { %v378_v52 = vpop.f32.mrf.mxu2 }
 0x1f3   :  { %434 = vst [vmem:[#allocation3 + $0xa0] sm:$0xff] %v378_v52  ;;  %v348_v53 = vpop.f32.mrf.mxu1 }
 0x1f4   :  { %424 = vst [vmem:[#allocation3 + $0x50] sm:$0xff] %v348_v53 }
 0x1fa   :  { %v381_v54 = vpop.f32.mrf.mxu2 }
 0x1fb   :  { %435 = vst [vmem:[#allocation3 + $0xa8] sm:$0xff] %v381_v54 }
 0x202   :  { %v384_v55 = vpop.f32.mrf.mxu2 }
 0x203   :  { %436 = vst [vmem:[#allocation3 + $0xb0] sm:$0xff] %v384_v55 }
 0x204   :  { %458 = dma.vmem_to_hbm [thread:$0]  %s451_s1, 4096, %s453_s10, [#allocation4], %s654_s11, %s654_s11, %s655_s12  }
 0x205   :  { %651 = dma.done.wait [#allocation4], 4096  }
 0x206   :  { %652 = vsyncadd [#allocation4], 4294963200 }
 0x207   :  { %463 = vsyncpa [#allocation4], 1 }

</bundles_post_ra>
